<compile_context>
chip_gen: v5e
topology: v5e:2x2
jax: 0.10.0
libtpu: 0.0.40
codegen_flags: <defaults>
</compile_context>

<pallas_src>
import jax
import jax.numpy as jnp
from jax.experimental import pallas as pl
from jax.experimental.pallas import tpu as pltpu


def latent_actor_kernel(
    obs_ref,            # (TB, OB)
    tw_ref,             # (OB, F)   trunk Linear weight
    tvec_ref,           # (3, F)    rows: [trunk_b ; ln_gamma ; ln_beta]
    w1_ref,             # (F, H)    policy layer 1 weight
    w2_ref,             # (H, H)    policy layer 2 weight
    b12_ref,            # (2, H)    rows: [b1 ; b2]
    w3_ref,             # (H, A)    policy layer 3 weight
    b3_ref,             # (1, A)    policy layer 3 bias
    mu_ref,             # (TB, A)   output: tanh-squashed mean
):
    x = obs_ref[...]

    # ---- trunk: Linear -> LayerNorm(eps=1e-5) -> Tanh ----
    h = jnp.dot(x, tw_ref[...], preferred_element_type=jnp.float32) + tvec_ref[0:1, :]
    m = jnp.mean(h, axis=-1, keepdims=True)
    v = jnp.mean((h - m) ** 2, axis=-1, keepdims=True)
    h = (h - m) * jax.lax.rsqrt(v + 1e-5)
    h = h * tvec_ref[1:2, :] + tvec_ref[2:3, :]
    h = jnp.tanh(h)

    # ---- policy MLP: Linear -> ReLU -> Linear -> ReLU -> Linear ----
    z = jnp.dot(h, w1_ref[...], preferred_element_type=jnp.float32) + b12_ref[0:1, :]
    z = jnp.maximum(z, 0.0)
    z = jnp.dot(z, w2_ref[...], preferred_element_type=jnp.float32) + b12_ref[1:2, :]
    z = jnp.maximum(z, 0.0)
    pre = jnp.dot(z, w3_ref[...], preferred_element_type=jnp.float32) + b3_ref[...]

    # mu = tanh(pre) * action_scale + action_shift  (scale=1, shift=0)
    mu_ref[...] = jnp.tanh(pre)


def latent_actor(obs, params, *, tile_b=None):
    """Returns mu = tanh(policy(trunk(obs))).  std handling (ClampedGaussian) is a
    trivial broadcast done by the caller."""
    B, OB = obs.shape
    F = params["trunk_w"].shape[1]
    H = params["p_w1"].shape[1]
    A = params["p_w3"].shape[1]

    if tile_b is None:
        # Whole batch in one step for small B; otherwise a big sublane-aligned tile.
        tile_b = B if B <= 256 else 256
    assert B % tile_b == 0
    assert tile_b == B or tile_b % 8 == 0, "tile_b must be 8-aligned or the full batch"
    grid = (B // tile_b,)

    tvec = jnp.concatenate([params["trunk_b"], params["ln_w"], params["ln_b"]], axis=0)
    b12 = jnp.concatenate([params["p_b1"], params["p_b2"]], axis=0)

    param_vals = [
        params["trunk_w"], tvec,
        params["p_w1"], params["p_w2"], b12,
        params["p_w3"], params["p_b3"],
    ]

    def full_spec(arr):
        return pl.BlockSpec(arr.shape, lambda i: (0, 0))

    in_specs = [pl.BlockSpec((tile_b, OB), lambda i: (i, 0))] + [
        full_spec(p) for p in param_vals
    ]
    out_specs = pl.BlockSpec((tile_b, A), lambda i: (i, 0))

    flops = 2 * B * (OB * F + F * H + H * H + H * A)
    transcendentals = B * (F + A)                      # tanh in trunk + squash
    bytes_accessed = 4 * (
        B * OB + B * A
        + OB * F + 3 * F + F * H + H * H + 2 * H + H * A + A
    )

    return pl.pallas_call(
        latent_actor_kernel,
        out_shape=jax.ShapeDtypeStruct((B, A), jnp.float32),
        grid_spec=pltpu.PrefetchScalarGridSpec(
            num_scalar_prefetch=0,
            grid=grid,
            in_specs=in_specs,
            out_specs=out_specs,
        ),
        compiler_params=pltpu.CompilerParams(
            dimension_semantics=("parallel",)),
        cost_estimate=pl.CostEstimate(
            flops=flops,
            transcendentals=transcendentals,
            bytes_accessed=bytes_accessed),
    )(obs, *param_vals)


def init_params(key, ob_rep_dim, act_rep_dim, feature_dim, hidden_dim):
    """Deterministic synthetic init (orthogonal init replaced by scaled normal)."""
    keys = jax.random.split(key, 4)

    def lin(k, fan_in, fan_out):
        w = jax.random.normal(k, (fan_in, fan_out), jnp.float32) / jnp.sqrt(fan_in)
        b = jnp.zeros((1, fan_out), jnp.float32)
        return w, b

    tw, tb = lin(keys[0], ob_rep_dim, feature_dim)
    ln_w = jnp.ones((1, feature_dim), jnp.float32)
    ln_b = jnp.zeros((1, feature_dim), jnp.float32)
    w1, b1 = lin(keys[1], feature_dim, hidden_dim)
    w2, b2 = lin(keys[2], hidden_dim, hidden_dim)
    w3, b3 = lin(keys[3], hidden_dim, act_rep_dim)

    return {
        "trunk_w": tw, "trunk_b": tb, "ln_w": ln_w, "ln_b": ln_b,
        "p_w1": w1, "p_b1": b1,
        "p_w2": w2, "p_b2": b2,
        "p_w3": w3, "p_b3": b3,
    }


def reference_forward(obs, p):
    h = obs @ p["trunk_w"] + p["trunk_b"]
    m = jnp.mean(h, axis=-1, keepdims=True)
    v = jnp.mean((h - m) ** 2, axis=-1, keepdims=True)
    h = (h - m) * jax.lax.rsqrt(v + 1e-5) * p["ln_w"] + p["ln_b"]
    h = jnp.tanh(h)
    z = jnp.maximum(h @ p["p_w1"] + p["p_b1"], 0.0)
    z = jnp.maximum(z @ p["p_w2"] + p["p_b2"], 0.0)
    pre = z @ p["p_w3"] + p["p_b3"]
    return jnp.tanh(pre)


if __name__ == "__main__":
    OB_REP, ACT_REP, FEAT, HID = 32, 8, 32, 32
    B = 16
    STD = 0.2

    key = jax.random.PRNGKey(0)
    k_obs, k_par = jax.random.split(key, 2)
    obs = jax.random.normal(k_obs, (B, OB_REP), jnp.float32)
    params = init_params(k_par, OB_REP, ACT_REP, FEAT, HID)

    mu = latent_actor(obs, params)          # single grid step for B=16
    mu = jax.block_until_ready(mu)

    # std of the ClampedGaussian is a trivial broadcast outside the kernel.
    # TODO(synk): utils.ClampedGaussian distribution object has no Pallas
    # equivalent; the kernel returns the distribution parameters (mu, std).
    std = jnp.full_like(mu, STD)

    ref_mu = reference_forward(obs, params)
    assert jnp.allclose(mu, ref_mu, atol=1e-4, rtol=1e-4), "mu mismatch"
    assert std.shape == mu.shape

    print("KERNEL_OK")
</pallas_src>

<mosaic_0001>
module attributes {stable_mosaic.version = 11 : i64} {
  func.func @latent_actor_kernel(%arg0: i32, %arg1: memref<16x32xf32, #tpu.memory_space<vmem>>, %arg2: memref<32x32xf32, #tpu.memory_space<vmem>>, %arg3: memref<3x32xf32, #tpu.memory_space<vmem>>, %arg4: memref<32x32xf32, #tpu.memory_space<vmem>>, %arg5: memref<32x32xf32, #tpu.memory_space<vmem>>, %arg6: memref<2x32xf32, #tpu.memory_space<vmem>>, %arg7: memref<32x8xf32, #tpu.memory_space<vmem>>, %arg8: memref<1x8xf32, #tpu.memory_space<vmem>>, %arg9: memref<16x8xf32, #tpu.memory_space<vmem>>) attributes {dimension_semantics = [#tpu.dimension_semantics<parallel>], iteration_bounds = array<i64: 1>, scalar_prefetch = 0 : i64, scratch_operands = 0 : i64, tpu.core_type = #tpu.core_type<tc>, window_params = [{transform_indices = @transform_0, window_bounds = array<i64: 16, 32>}, {pipeline_mode = #tpu.pipeline_mode<synchronous>, transform_indices = @transform_1, window_bounds = array<i64: 32, 32>}, {pipeline_mode = #tpu.pipeline_mode<synchronous>, transform_indices = @transform_2, window_bounds = array<i64: 3, 32>}, {pipeline_mode = #tpu.pipeline_mode<synchronous>, transform_indices = @transform_3, window_bounds = array<i64: 32, 32>}, {pipeline_mode = #tpu.pipeline_mode<synchronous>, transform_indices = @transform_4, window_bounds = array<i64: 32, 32>}, {pipeline_mode = #tpu.pipeline_mode<synchronous>, transform_indices = @transform_5, window_bounds = array<i64: 2, 32>}, {pipeline_mode = #tpu.pipeline_mode<synchronous>, transform_indices = @transform_6, window_bounds = array<i64: 32, 8>}, {pipeline_mode = #tpu.pipeline_mode<synchronous>, transform_indices = @transform_7, window_bounds = array<i64: 1, 8>}, {transform_indices = @transform_8, window_bounds = array<i64: 16, 8>}]} {
    %c0 = arith.constant 0 : index
    %c0_0 = arith.constant 0 : index
    %0 = vector.load %arg1[%c0, %c0_0] : memref<16x32xf32, #tpu.memory_space<vmem>>, vector<16x32xf32>
    %c0_1 = arith.constant 0 : index
    %c0_2 = arith.constant 0 : index
    %1 = vector.load %arg2[%c0_1, %c0_2] : memref<32x32xf32, #tpu.memory_space<vmem>>, vector<32x32xf32>
    %cst = arith.constant dense<0.000000e+00> : vector<16x32xf32>
    %2 = tpu.matmul %0, %1, %cst {dimension_numbers = #tpu.dot_dimension_numbers<[1], [0], [0], [1], [0, 0, 1, 1], [], []>} : vector<16x32xf32>, vector<32x32xf32>, vector<16x32xf32> -> vector<16x32xf32>
    %c0_3 = arith.constant 0 : index
    %c0_4 = arith.constant 0 : index
    %3 = vector.load %arg3[%c0_3, %c0_4] : memref<3x32xf32, #tpu.memory_space<vmem>>, vector<1x32xf32>
    %4 = vector.broadcast %3 : vector<1x32xf32> to vector<16x32xf32>
    %5 = arith.addf %2, %4 : vector<16x32xf32>
    %cst_5 = arith.constant dense<0.000000e+00> : vector<16xf32>
    %6 = vector.multi_reduction <add>, %5, %cst_5 [1] : vector<16x32xf32> to vector<16xf32>
    %7 = vector.shape_cast %6 : vector<16xf32> to vector<16x1xf32>
    %cst_6 = arith.constant 3.200000e+01 : f32
    %8 = vector.broadcast %cst_6 : f32 to vector<16x1xf32>
    %9 = arith.divf %7, %8 : vector<16x1xf32>
    %10 = vector.broadcast %9 : vector<16x1xf32> to vector<16x32xf32>
    %11 = arith.subf %5, %10 : vector<16x32xf32>
    %12 = arith.mulf %11, %11 : vector<16x32xf32>
    %cst_7 = arith.constant dense<0.000000e+00> : vector<16xf32>
    %13 = vector.multi_reduction <add>, %12, %cst_7 [1] : vector<16x32xf32> to vector<16xf32>
    %14 = vector.shape_cast %13 : vector<16xf32> to vector<16x1xf32>
    %cst_8 = arith.constant 3.200000e+01 : f32
    %15 = vector.broadcast %cst_8 : f32 to vector<16x1xf32>
    %16 = arith.divf %14, %15 : vector<16x1xf32>
    %17 = vector.broadcast %9 : vector<16x1xf32> to vector<16x32xf32>
    %18 = arith.subf %5, %17 : vector<16x32xf32>
    %cst_9 = arith.constant 9.99999974E-6 : f32
    %19 = vector.broadcast %cst_9 : f32 to vector<16x1xf32>
    %20 = arith.addf %16, %19 : vector<16x1xf32>
    %21 = math.rsqrt %20 : vector<16x1xf32>
    %22 = vector.broadcast %21 : vector<16x1xf32> to vector<16x32xf32>
    %23 = arith.mulf %18, %22 : vector<16x32xf32>
    %c1 = arith.constant 1 : index
    %c0_10 = arith.constant 0 : index
    %24 = vector.load %arg3[%c1, %c0_10] : memref<3x32xf32, #tpu.memory_space<vmem>>, vector<1x32xf32>
    %25 = vector.broadcast %24 : vector<1x32xf32> to vector<16x32xf32>
    %26 = arith.mulf %23, %25 : vector<16x32xf32>
    %c2 = arith.constant 2 : index
    %c0_11 = arith.constant 0 : index
    %27 = vector.load %arg3[%c2, %c0_11] : memref<3x32xf32, #tpu.memory_space<vmem>>, vector<1x32xf32>
    %28 = vector.broadcast %27 : vector<1x32xf32> to vector<16x32xf32>
    %29 = arith.addf %26, %28 : vector<16x32xf32>
    %30 = math.tanh %29 : vector<16x32xf32>
    %c0_12 = arith.constant 0 : index
    %c0_13 = arith.constant 0 : index
    %31 = vector.load %arg4[%c0_12, %c0_13] : memref<32x32xf32, #tpu.memory_space<vmem>>, vector<32x32xf32>
    %cst_14 = arith.constant dense<0.000000e+00> : vector<16x32xf32>
    %32 = tpu.matmul %30, %31, %cst_14 {dimension_numbers = #tpu.dot_dimension_numbers<[1], [0], [0], [1], [0, 0, 1, 1], [], []>} : vector<16x32xf32>, vector<32x32xf32>, vector<16x32xf32> -> vector<16x32xf32>
    %c0_15 = arith.constant 0 : index
    %c0_16 = arith.constant 0 : index
    %33 = vector.load %arg6[%c0_15, %c0_16] : memref<2x32xf32, #tpu.memory_space<vmem>>, vector<1x32xf32>
    %34 = vector.broadcast %33 : vector<1x32xf32> to vector<16x32xf32>
    %35 = arith.addf %32, %34 : vector<16x32xf32>
    %cst_17 = arith.constant 0.000000e+00 : f32
    %36 = vector.broadcast %cst_17 : f32 to vector<16x32xf32>
    %37 = arith.maximumf %35, %36 : vector<16x32xf32>
    %c0_18 = arith.constant 0 : index
    %c0_19 = arith.constant 0 : index
    %38 = vector.load %arg5[%c0_18, %c0_19] : memref<32x32xf32, #tpu.memory_space<vmem>>, vector<32x32xf32>
    %cst_20 = arith.constant dense<0.000000e+00> : vector<16x32xf32>
    %39 = tpu.matmul %37, %38, %cst_20 {dimension_numbers = #tpu.dot_dimension_numbers<[1], [0], [0], [1], [0, 0, 1, 1], [], []>} : vector<16x32xf32>, vector<32x32xf32>, vector<16x32xf32> -> vector<16x32xf32>
    %c1_21 = arith.constant 1 : index
    %c0_22 = arith.constant 0 : index
    %40 = vector.load %arg6[%c1_21, %c0_22] : memref<2x32xf32, #tpu.memory_space<vmem>>, vector<1x32xf32>
    %41 = vector.broadcast %40 : vector<1x32xf32> to vector<16x32xf32>
    %42 = arith.addf %39, %41 : vector<16x32xf32>
    %cst_23 = arith.constant 0.000000e+00 : f32
    %43 = vector.broadcast %cst_23 : f32 to vector<16x32xf32>
    %44 = arith.maximumf %42, %43 : vector<16x32xf32>
    %c0_24 = arith.constant 0 : index
    %c0_25 = arith.constant 0 : index
    %45 = vector.load %arg7[%c0_24, %c0_25] : memref<32x8xf32, #tpu.memory_space<vmem>>, vector<32x8xf32>
    %cst_26 = arith.constant dense<0.000000e+00> : vector<16x8xf32>
    %46 = tpu.matmul %44, %45, %cst_26 {dimension_numbers = #tpu.dot_dimension_numbers<[1], [0], [0], [1], [0, 0, 1, 1], [], []>} : vector<16x32xf32>, vector<32x8xf32>, vector<16x8xf32> -> vector<16x8xf32>
    %c0_27 = arith.constant 0 : index
    %c0_28 = arith.constant 0 : index
    %47 = vector.load %arg8[%c0_27, %c0_28] : memref<1x8xf32, #tpu.memory_space<vmem>>, vector<1x8xf32>
    %48 = vector.broadcast %47 : vector<1x8xf32> to vector<16x8xf32>
    %49 = arith.addf %46, %48 : vector<16x8xf32>
    %50 = math.tanh %49 : vector<16x8xf32>
    %c0_29 = arith.constant 0 : index
    %c0_30 = arith.constant 0 : index
    %51 = vector.load %arg9[%c0_29, %c0_30] : memref<16x8xf32, #tpu.memory_space<vmem>>, vector<16x8xf32>
    tpu.vector_store %arg9[%c0_29, %c0_30], %50 {strides = array<i32>} : memref<16x8xf32, #tpu.memory_space<vmem>>, vector<16x8xf32>,
    return
  }
  func.func @transform_0(%arg0: i32) -> (i32, i32) {
    %c0_i32 = arith.constant 0 : i32
    %c0_i32_0 = arith.constant 0 : i32
    return %arg0, %c0_i32 : i32, i32
  }
  func.func @transform_1(%arg0: i32) -> (i32, i32) {
    %c0_i32 = arith.constant 0 : i32
    %c0_i32_0 = arith.constant 0 : i32
    %c0_i32_1 = arith.constant 0 : i32
    return %c0_i32, %c0_i32_0 : i32, i32
  }
  func.func @transform_2(%arg0: i32) -> (i32, i32) {
    %c0_i32 = arith.constant 0 : i32
    %c0_i32_0 = arith.constant 0 : i32
    %c0_i32_1 = arith.constant 0 : i32
    return %c0_i32, %c0_i32_0 : i32, i32
  }
  func.func @transform_3(%arg0: i32) -> (i32, i32) {
    %c0_i32 = arith.constant 0 : i32
    %c0_i32_0 = arith.constant 0 : i32
    %c0_i32_1 = arith.constant 0 : i32
    return %c0_i32, %c0_i32_0 : i32, i32
  }
  func.func @transform_4(%arg0: i32) -> (i32, i32) {
    %c0_i32 = arith.constant 0 : i32
    %c0_i32_0 = arith.constant 0 : i32
    %c0_i32_1 = arith.constant 0 : i32
    return %c0_i32, %c0_i32_0 : i32, i32
  }
  func.func @transform_5(%arg0: i32) -> (i32, i32) {
    %c0_i32 = arith.constant 0 : i32
    %c0_i32_0 = arith.constant 0 : i32
    %c0_i32_1 = arith.constant 0 : i32
    return %c0_i32, %c0_i32_0 : i32, i32
  }
  func.func @transform_6(%arg0: i32) -> (i32, i32) {
    %c0_i32 = arith.constant 0 : i32
    %c0_i32_0 = arith.constant 0 : i32
    %c0_i32_1 = arith.constant 0 : i32
    return %c0_i32, %c0_i32_0 : i32, i32
  }
  func.func @transform_7(%arg0: i32) -> (i32, i32) {
    %c0_i32 = arith.constant 0 : i32
    %c0_i32_0 = arith.constant 0 : i32
    %c0_i32_1 = arith.constant 0 : i32
    return %c0_i32, %c0_i32_0 : i32, i32
  }
  func.func @transform_8(%arg0: i32) -> (i32, i32) {
    %c0_i32 = arith.constant 0 : i32
    %c0_i32_0 = arith.constant 0 : i32
    return %arg0, %c0_i32 : i32, i32
  }
}

</mosaic_0001>

<bundles_post_ra>
// kernel: tpu_custom_call.1
= control target key start
LH: loop header
LB: loop body
LE: loop exit
PB: predicated region body
PF: predicated region fallthrough
CT: control target
= control target key end

     0   :  { %13 = vsyncpa [#allocation3], 0  ;;  %s527_s0 = inlined_call_operand.hbm [shape: f32[16,32], index: 0, kind: input, shape index: {}]   ;;  %s528_s1 = inlined_call_operand.vmem [shape: f32[32,32], index: 1, kind: input, shape index: {}]   ;;  %s529_s2 = inlined_call_operand.vmem [shape: f32[3,32], index: 2, kind: input, shape index: {}]   ;;  %s530_s3 = inlined_call_operand.hbm [shape: f32[32,32], index: 3, kind: input, shape index: {}]   ;;  %s531_s4 = inlined_call_operand.hbm [shape: f32[32,32], index: 4, kind: input, shape index: {}]   ;;  %s532_s5 = inlined_call_operand.vmem [shape: f32[2,32], index: 5, kind: input, shape index: {}]   ;;  %s533_s6 = inlined_call_operand.vmem [shape: f32[32,8], index: 6, kind: input, shape index: {}]   ;;  %s534_s7 = inlined_call_operand.vmem [shape: f32[1,8], index: 7, kind: input, shape index: {}]   ;;  %s535_s8 = inlined_call_operand.vmem [shape: f32[16,8], index: 8, kind: output, shape index: {}]  }
   0x1   :  { %14 = vsyncpa [#allocation5], 0  ;;  %s36_s29 = sshll.u32 %s530_s3, 4  ;;  %s407_s30 = smov [#allocation4]   ;;  %s37_s29 = int_to_ptr.hbm [resolvable:$true] %s36_s29 }
   0x2   :  { %s38_s9 = sshll.u32 %s407_s30, 4  ;;  %s19_s12 = sshll.u32 %s527_s0, 4  ;;  %s39_s9 = int_to_ptr.vmem [resolvable:$true] %s38_s9  ;;  %s20_s12 = int_to_ptr.hbm [resolvable:$true] %s19_s12 }
   0x3   :  { %s408_s13 = smov 128   ;;  %s409_s14 = smov 8  }
   0x4   :  { %44 = dma.hbm_to_vmem [thread:$0]  %s37_s29, 512, %s39_s9, [#allocation5], %s408_s13, %s408_s13, %s409_s14  }
   0x5   :  { %s410_s15 = smov [#allocation2]   ;;  %s49_s19 = sshll.u32 %s531_s4, 4  ;;  %s50_s19 = int_to_ptr.hbm [resolvable:$true] %s49_s19 }
   0x6   :  { %s21_s16 = sshll.u32 %s410_s15, 4  ;;  %s411_s3 = smov [#allocation6]   ;;  %s22_s16 = int_to_ptr.vmem [resolvable:$true] %s21_s16 }
   0x7   :  { %27 = dma.hbm_to_vmem [thread:$0]  %s20_s12, 256, %s22_s16, [#allocation3], %s408_s13, %s408_s13, %s409_s14  }
   0x8   :  { %s51_s20 = sshll.u32 %s411_s3, 4  ;;  %s52_s20 = int_to_ptr.vmem [resolvable:$true] %s51_s20 }
   0x9   :  { %57 = dma.hbm_to_vmem [thread:$0]  %s50_s19, 512, %s52_s20, [#allocation5], %s408_s13, %s408_s13, %s409_s14  }
   0xa   :  { %403 = dma.done.wait [#allocation3], 256  }
   0xb   :  { %404 = vsyncadd [#allocation3], 4294967040 }
   0xc   :  { %405 = dma.done.wait [#allocation5], 1024  }
   0xd   :  { %406 = vsyncadd [#allocation5], 4294966272  ;;  %v81_v0 = vld [vmem:[%s528_s1 + $0x18] sm:$0xff]  ;;  %v80_v1 = vld [vmem:[%s528_s1 + $0x10] sm:$0xff]  ;;  %vm84_vm0 = vcmask 261120   ;;  %v412_v13 = vmov 32.0  }
   0xe   :  { %103 = vmatpush.msra.mxu0 %v81_v0  ;;  %v79_v2 = vld [vmem:[%s528_s1 + $0x8] sm:$0xff]  ;;  %v78_v3 = vld [vmem:[%s528_s1] sm:$0xff]  ;;  %317 = vrcp.f32 %v412_v13  ;;  %v176_v33 = vld [vmem:[#allocation4 + $0x8] sm:$0xff]  ;;  %vm288_vm8 = vcmask 64512  }
   0xf   :  { %v76_v4 = vld [vmem:[#allocation2] sm:$0xff]  ;;  %v77_v5 = vld [vmem:[#allocation2 + $0x8] sm:$0xff]  ;;  %v175_v35 = vld [vmem:[#allocation4] sm:$0xff] }
  0x10   :  { %104 = vmatpush.msra.mxu0 %v80_v1  ;;  %v311_v6 = vld [vmem:[%s529_s2] ss:$0 sm:$0xff]  ;;  %v178_v30 = vld [vmem:[#allocation4 + $0x18] sm:$0xff]  ;;  %v312_v49 = vld [vmem:[%s529_s2 + $0x1] ss:$0 sm:$0xff] }
  0x11   :  { %199 = vmatpush.msra.mxu1 %v178_v30  ;;  %v177_v31 = vld [vmem:[#allocation4 + $0x10] sm:$0xff]  ;;  %v215_v42 = vld [vmem:[#allocation6 + $0x18] sm:$0xff] }
  0x12   :  { %105 = vmatpush.msra.mxu0 %v79_v2  ;;  %236 = vmatpush.msra.mxu2 %v215_v42  ;;  %v313_v52 = vld [vmem:[%s529_s2 + $0x2] ss:$0 sm:$0xff]  ;;  %v213_v2 = vld [vmem:[#allocation6 + $0x8] sm:$0xff]  ;;  %v250_v13 = vld [vmem:[%s533_s6 + $0x8] sm:$0xff] }
  0x13   :  { %200 = vmatpush.msra.mxu1 %v177_v31  ;;  %v214_v1 = vld [vmem:[#allocation6 + $0x10] sm:$0xff] }
  0x14   :  { %106 = vmatpush.msra.mxu0 %v78_v3  ;;  %v318_v14 = vpop.eup %317  ;;  %237 = vmatpush.msra.mxu2 %v214_v1  ;;  %v212_v3 = vld [vmem:[#allocation6] sm:$0xff] }
  0x15   :  { %297 = vmatmul.msk.f32.vlgmr.msra.gmra.mxu0 %vm84_vm0, %v76_v4  ;;  %v121_v15 = vmul.f32 32.0, %v318_v14  ;;  %vm125_vm1 = vweird.f32 %v318_v14  ;;  %201 = vmatpush.msra.mxu1 %v176_v33  ;;  %v252_v4 = vld [vmem:[%s533_s6 + $0x18] sm:$0xff] }
  0x16   :  { %238 = vmatpush.msra.mxu2 %v213_v2  ;;  %275 = vmatpush.msra.mxu3 %v252_v4 }
  0x17   :  { %v122_v16 = vsub.f32 1.0, %v121_v15  ;;  %202 = vmatpush.msra.mxu1 %v175_v35  ;;  %v315_v15 = vld [vmem:[%s532_s5 + $0x1] ss:$0 sm:$0xff] }
  0x18   :  { %239 = vmatpush.msra.mxu2 %v212_v3 }
  0x19   :  { %v123_v17 = vmul.f32 %v318_v14, %v122_v16 }
  0x1b   :  { %v124_v18 = vadd.f32 %v318_v14, %v123_v17 }
  0x1d   :  { %298 = vmatmul.msk.f32.gmra.mxu0 %vm84_vm0, %v77_v5  ;;  %v126_v19 = vsel %vm125_vm1, %v318_v14, %v124_v18  ;;  %v314_v5 = vld [vmem:[%s532_s5] ss:$0 sm:$0xff] }
  0x1e   :  { %v249_v14 = vld [vmem:[%s533_s6] sm:$0xff] }
  0x92   :  { %v108_v7 = vpop.f32.mrf.mxu0 }
  0x93   :  { %v109_v8 = vadd.f32 %v311_v6, %v108_v7 }
  0x95   :  { %v114_v9 = vsel %vm84_vm0, %v109_v8, 0.0 }
  0x96   :  { %115 = vadd.xlane.f32.xlu0 %v114_v9 }
  0x9a   :  { %v111_v10 = vpop.f32.mrf.mxu0 }
  0x9b   :  { %v112_v11 = vadd.f32 %v311_v6, %v111_v10 }
  0x9d   :  { %v117_v12 = vsel %vm84_vm0, %v112_v11, 0.0 }
  0x9e   :  { %118 = vadd.xlane.f32.xlu0 %v117_v12  ;;  %v251_v12 = vld [vmem:[%s533_s6 + $0x10] sm:$0xff] }
  0x9f   :  { %276 = vmatpush.msra.mxu3 %v251_v12 }
  0xa1   :  { %277 = vmatpush.msra.mxu3 %v250_v13 }
  0xa3   :  { %278 = vmatpush.msra.mxu3 %v249_v14 }
 0x109   :  { %v116_v20 = vpop.xlane.xlu0 %115 }
 0x10a   :  { %v127_v21 = vmul.f32 %v126_v19, %v116_v20 }
 0x10c   :  { %v129_v22 = vsub.f32 %v109_v8, %v127_v21 }
 0x10e   :  { %v131_v23 = vmul.f32 %v129_v22, %v129_v22 }
 0x110   :  { %v133_v24 = vsel %vm84_vm0, %v131_v23, 0.0 }
 0x111   :  { %134 = vadd.xlane.f32.xlu1 %v133_v24  ;;  %v119_v25 = vpop.xlane.xlu0 %118 }
 0x112   :  { %v128_v26 = vmul.f32 %v126_v19, %v119_v25 }
 0x114   :  { %v130_v27 = vsub.f32 %v112_v11, %v128_v26 }
 0x116   :  { %v132_v28 = vmul.f32 %v130_v27, %v130_v27 }
 0x118   :  { %v136_v29 = vsel %vm84_vm0, %v132_v28, 0.0 }
 0x119   :  { %137 = vadd.xlane.f32.xlu1 %v136_v29 }
 0x184   :  { %v135_v32 = vpop.xlane.xlu1 %134 }
 0x185   :  { %v139_v34 = vmul.f32 %v135_v32, %v126_v19 }
 0x187   :  { %v141_v36 = vadd.f32 1e-05, %v139_v34 }
 0x189   :  { %319 = vrsqrt.f32 %v141_v36  ;;  %vm149_vm3 = vweird.f32 %v141_v36 }
 0x18c   :  { %v138_v37 = vpop.xlane.xlu1 %137 }
 0x18d   :  { %v140_v38 = vmul.f32 %v138_v37, %v126_v19 }
 0x18f   :  { %v320_v39 = vpop.eup %319  ;;  %v142_v40 = vadd.f32 1e-05, %v140_v38 }
 0x190   :  { %v144_v41 = vmul.f32 %v320_v39, %v141_v36  ;;  %vm150_vm2 = vweird.f32 %v320_v39 }
 0x191   :  { %321 = vrsqrt.f32 %v142_v40  ;;  %vm151_vm4 = vmor %vm149_vm3, %vm150_vm2  ;;  %vm159_vm6 = vweird.f32 %v142_v40 }
 0x192   :  { %v145_v43 = vmul.f32 %v320_v39, %v144_v41 }
 0x194   :  { %v146_v44 = vmul.f32 0.5, %v145_v43 }
 0x196   :  { %v147_v45 = vsub.f32 1.5, %v146_v44 }
 0x197   :  { %v322_v46 = vpop.eup %321 }
 0x198   :  { %v148_v47 = vmul.f32 %v320_v39, %v147_v45  ;;  %v154_v48 = vmul.f32 %v322_v46, %v142_v40  ;;  %vm160_vm5 = vweird.f32 %v322_v46 }
 0x199   :  { %vm161_vm7 = vmor %vm159_vm6, %vm160_vm5 }
 0x19a   :  { %v152_v50 = vsel %vm151_vm4, %v320_v39, %v148_v47  ;;  %v155_v51 = vmul.f32 %v322_v46, %v154_v48 }
 0x19b   :  { %v163_v53 = vmul.f32 %v152_v50, %v129_v22  ;;  %v316_v22 = vld [vmem:[%s534_s7] ss:$0 sm:$0xff] }
 0x19c   :  { %v156_v54 = vmul.f32 0.5, %v155_v51 }
 0x19d   :  { %v167_v55 = vmul.f32 %v312_v49, %v163_v53 }
 0x19e   :  { %v157_v56 = vsub.f32 1.5, %v156_v54 }
 0x19f   :  { %v171_v57 = vadd.f32 %v313_v52, %v167_v55 }
 0x1a0   :  { %v158_v58 = vmul.f32 %v322_v46, %v157_v56 }
 0x1a1   :  { %323 = vtanh.f32 %v171_v57 }
 0x1a2   :  { %v162_v59 = vsel %vm161_vm7, %v322_v46, %v158_v58 }
 0x1a3   :  { %v164_v60 = vmul.f32 %v162_v59, %v130_v27 }
 0x1a5   :  { %v168_v61 = vmul.f32 %v312_v49, %v164_v60 }
 0x1a7   :  { %v324_v62 = vpop.eup %323  ;;  %v172_v63 = vadd.f32 %v313_v52, %v168_v61 }
 0x1a8   :  { %299 = vmatmul.msk.f32.vlgmr.msra.gmra.mxu1 %vm84_vm0, %v324_v62 }
 0x1a9   :  { %325 = vtanh.f32 %v172_v63 }
 0x1af   :  { %v326_v0 = vpop.eup %325 }
 0x1b0   :  { %300 = vmatmul.msk.f32.gmra.mxu1 %vm84_vm0, %v326_v0 }
 0x225   :  { %v204_v6 = vpop.f32.mrf.mxu1 }
 0x226   :  { %v205_v7 = vadd.f32 %v314_v5, %v204_v6 }
 0x228   :  { %v210_v8 = vmax.f32 %v205_v7, 0.0 }
 0x22a   :  { %301 = vmatmul.msk.f32.vlgmr.msra.gmra.mxu2 %vm84_vm0, %v210_v8 }
 0x22d   :  { %v207_v9 = vpop.f32.mrf.mxu1 }
 0x22e   :  { %v208_v10 = vadd.f32 %v314_v5, %v207_v9 }
 0x230   :  { %v211_v11 = vmax.f32 %v208_v10, 0.0 }
 0x232   :  { %302 = vmatmul.msk.f32.gmra.mxu2 %vm84_vm0, %v211_v11 }
 0x2ad   :  { %v241_v16 = vpop.f32.mrf.mxu2 }
 0x2ae   :  { %v242_v17 = vadd.f32 %v315_v15, %v241_v16 }
 0x2b0   :  { %v247_v18 = vmax.f32 %v242_v17, 0.0 }
 0x2b2   :  { %303 = vmatmul.msk.f32.vlgmr.msra.gmra.mxu3 %vm84_vm0, %v247_v18 }
 0x2b5   :  { %v244_v19 = vpop.f32.mrf.mxu2 }
 0x2b6   :  { %v245_v20 = vadd.f32 %v315_v15, %v244_v19 }
 0x2b8   :  { %v248_v21 = vmax.f32 %v245_v20, 0.0 }
 0x2ba   :  { %304 = vmatmul.msk.f32.gmra.mxu3 %vm84_vm0, %v248_v21 }
 0x335   :  { %v280_v23 = vpop.f32.mrf.mxu3 }
 0x336   :  { %v281_v24 = vadd.f32 %v316_v22, %v280_v23 }
 0x338   :  { %327 = vtanh.f32 %v281_v24 }
 0x33d   :  { %v283_v25 = vpop.f32.mrf.mxu3 }
 0x33e   :  { %v328_v26 = vpop.eup %327  ;;  %v284_v27 = vadd.f32 %v316_v22, %v283_v25 }
 0x33f   :  { %289 = vst.msk [vmem:[%s535_s8] sm:$0xff] %vm288_vm8, %v328_v26 }
 0x340   :  { %329 = vtanh.f32 %v284_v27 }
 0x346   :  { %v330_v28 = vpop.eup %329 }
 0x347   :  { %290 = vst.msk [vmem:[%s535_s8 + $0x8] sm:$0xff] %vm288_vm8, %v330_v28 }
 0x348   :  { %295 = vsyncpa [#allocation3], 1 }
 0x349   :  { %296 = vsyncpa [#allocation5], 1 }

</bundles_post_ra>
